<compile_context>
chip_gen: v7x
topology: tpu7x:2x2x1
jax: 0.10.0
libtpu: 0.0.40
codegen_flags: <defaults>
</compile_context>

<pallas_src>
import functools

import jax
import jax.numpy as jnp
import numpy as np
from jax.experimental import pallas as pl
from jax.experimental.pallas import tpu as pltpu

D_IN = 128                 # small stand-in for d_input_dim (MNIST would be 784)
H1, H2, H3 = 256, 128, 64
LEAK = 0.2
P_DROP = 0.3
KEEP_SCALE = 1.0 / (1.0 - P_DROP)

# numpy scalars -> jaxpr literals (a jnp array here is rejected by pallas_call
# as a captured constant).
_DROP_THR = np.uint32(int(P_DROP * (1 << 32)))    # keep iff bits >= thr
_C1 = np.uint32(0x7FEB352D)
_C2 = np.uint32(0x846CA68B)
_ROW_MUL = np.uint32(0x9E3779B9)
_COL_MUL = np.uint32(0x85EBCA6B)


def _round_up(x, m):
    return (x + m - 1) // m * m


def _mix(x):
    # lowbias32 integer hash (uint32 -> uint32, wraps mod 2^32).  Only ever
    # applied to the cheap [tb,1] / [1,N] vectors, never to the full tile.
    x = x ^ (x >> 16)
    x = x * _C1
    x = x ^ (x >> 15)
    x = x * _C2
    x = x ^ (x >> 16)
    return x


def _dropout_keep(shape, row_start, seed_u32, salt):
    """Counter-based keep mask: deterministic per (seed, layer, global row,
    col), independent of tiling / grid execution order.  Works identically
    inside the kernel (tracers) and in the pure-JAX reference."""
    rows = jax.lax.broadcasted_iota(jnp.int32, (shape[0], 1), 0).astype(jnp.uint32)
    cols = jax.lax.broadcasted_iota(jnp.int32, (1, shape[1]), 1).astype(jnp.uint32)
    row_h = _mix((rows + row_start) * _ROW_MUL + seed_u32)    # [rows, 1] (cheap)
    col_h = _mix(cols * _COL_MUL + np.uint32(salt))           # [1, cols] (cheap)
    # Per-element work: one add + one multiply; the threshold compare uses the
    # well-mixed high bits of the product (multiply-shift hashing).
    bits = (row_h + col_h) * _C1
    return bits >= _DROP_THR                                  # P(keep) = 1 - p


def disc_kernel(seed_ref, x_ref, w1_ref, b1_ref, w2_ref, b2_ref,
                w3_ref, b3_ref, w4_ref, b4_ref, o_ref, *, training):
    tb = x_ref.shape[0]
    seed = seed_ref[0].astype(jnp.uint32)
    row_start = (pl.program_id(0) * tb).astype(jnp.uint32)    # global row offset

    def layer(h_in, w_ref, b_ref, salt):
        # bf16 operands, f32 MXU accumulation; elementwise epilogue stays f32
        # (safe on v5e: no bf16 VPU/EUP there).
        h = jnp.dot(h_in, w_ref[...], preferred_element_type=jnp.float32)
        h = h + b_ref[...]
        h = jnp.maximum(h, LEAK * h)                          # leaky_relu(0.2)
        if training:
            # F.dropout(p=0.3): zero w.p. p.  The 1/(1-p) survivor scale is
            # pre-folded into the next layer's weights by the wrapper, so the
            # in-kernel dropout is just compare + select.
            keep = _dropout_keep(h.shape, row_start, seed, salt)
            h = jnp.where(keep, h, 0.0)
        return h

    h = layer(x_ref[...].astype(jnp.bfloat16), w1_ref, b1_ref, 1)
    h = layer(h.astype(jnp.bfloat16), w2_ref, b2_ref, 2)
    h = layer(h.astype(jnp.bfloat16), w3_ref, b3_ref, 3)

    # fc4 (64 -> 1) would use ~1/256 of the MXU, so do it as a VPU multiply
    # plus an XLU lane reduction.  w4 is stored as a [1, 64] row.
    z = jnp.sum(h * w4_ref[...], axis=-1, keepdims=True) + b4_ref[...]
    o_ref[...] = (1.0 / (1.0 + jnp.exp(-z))).astype(o_ref.dtype)
    # NOTE: output kept as a (tb, 1) column (like flash-attention lse outputs);
    # a lane-dense (1, tb) layout would need a cross-lane relayout of the
    # column, which is not worth the small store saving after the epilogue cut.


def discriminator_forward(x, params, seed, *, tb=None, training=True):
    B, D = x.shape
    w1, b1, w2, b2, w3, b3, w4, b4 = params

    # ---- batch tile selection --------------------------------------------
    if tb is None:
        # Cap so the double-buffered f32 x tile stays <= ~8 MiB of VMEM even
        # for MNIST-sized D; large tiles amortize the ~0.35us grid-step cost.
        cap = min(4096, max(256, (4 * 1024 * 1024) // (4 * D)))
        if B <= 256:
            tb = B                       # tiny batch: a single tile
        else:
            # >= 2 tiles so the "parallel" batch grid can split across v7x's
            # two TensorCores; harmless on v5e/v6e (single TC).
            tb = min(cap, pl.cdiv(B, 2))
    tb = max(8, _round_up(min(tb, max(B, 8)), 8))     # sublane alignment
    ntiles = pl.cdiv(B, tb)
    Bp = ntiles * tb          # logical padded batch (output alloc only -- x is
                              # NOT padded or copied; ragged last tile clamps)

    # ---- weight prep (tiny, one-time, trace-level) -------------------------
    # bf16 matmul operands (f32 accumulation in-kernel).  Dropout keep-scale
    # of layer k is folded into layer k+1's weights.
    s = KEEP_SCALE if training else 1.0
    w1b = w1.astype(jnp.bfloat16)
    w2b = (w2 * s).astype(jnp.bfloat16)
    w3b = (w3 * s).astype(jnp.bfloat16)
    w4s = (w4 * s).astype(jnp.float32)
    seed = jnp.asarray(seed, jnp.int32).reshape((1,))

    def resident(arr):
        # Constant block index across the grid -> the pipeline keeps these
        # resident in VMEM (no per-step DMA).  (pl.Buffered(1) would shave one
        # redundant buffer but is skipped for portability.)
        return pl.BlockSpec(arr.shape, lambda i, seed_r: (0, 0))

    grid_spec = pltpu.PrefetchScalarGridSpec(
        num_scalar_prefetch=1,           # seed lands in SMEM
        grid=(ntiles,),
        in_specs=[
            pl.BlockSpec((tb, D), lambda i, seed_r: (i, 0)),   # x (f32, cast in-kernel)
            resident(w1b), resident(b1),
            resident(w2b), resident(b2),
            resident(w3b), resident(b3),
            resident(w4s), resident(b4),
        ],
        out_specs=pl.BlockSpec((tb, 1), lambda i, seed_r: (i, 0)),
    )
    out = pl.pallas_call(
        functools.partial(disc_kernel, training=training),
        out_shape=jax.ShapeDtypeStruct((Bp, 1), jnp.float32),
        grid_spec=grid_spec,
        compiler_params=pltpu.CompilerParams(
            # Batch tiles are independent (dropout bits hash the *global* row
            # index), so v7x may shard the grid across both TensorCores.
            dimension_semantics=("parallel",),
            # Sized to need (~<=20 MiB worst case); 64 MiB is all of v7x VMEM.
            vmem_limit_bytes=32 * 1024 * 1024,
        ),
    )(seed, x, w1b, b1, w2b, b2, w3b, b3, w4s, b4)
    return out[:B]


def discriminator_reference(x, params, seed, *, training=True):
    """Pure-JAX f32 reference using the same deterministic dropout bits."""
    w1, b1, w2, b2, w3, b3, w4, b4 = params
    seed_u32 = jnp.asarray(seed, jnp.int32).reshape((1,))[0].astype(jnp.uint32)

    def layer(h, w, b, salt):
        h = h @ w + b
        h = jnp.maximum(h, LEAK * h)
        if training:
            keep = _dropout_keep(h.shape, np.uint32(0), seed_u32, salt)
            h = jnp.where(keep, h * KEEP_SCALE, 0.0)
        return h

    h = layer(x, w1, b1, 1)
    h = layer(h, w2, b2, 2)
    h = layer(h, w3, b3, 3)
    z = jnp.sum(h * w4, axis=-1, keepdims=True) + b4
    return 1.0 / (1.0 + jnp.exp(-z))


def init_params(key, d_in):
    # PyTorch nn.Linear default init: U(-1/sqrt(fan_in), 1/sqrt(fan_in)).
    def linear(kw, kb, fan_in, fan_out, w_shape=None):
        bound = 1.0 / (fan_in ** 0.5)
        shape = (fan_in, fan_out) if w_shape is None else w_shape
        w = jax.random.uniform(kw, shape, jnp.float32, -bound, bound)
        b = jax.random.uniform(kb, (1, fan_out), jnp.float32, -bound, bound)
        return w, b

    ks = jax.random.split(key, 8)
    w1, b1 = linear(ks[0], ks[1], d_in, H1)
    w2, b2 = linear(ks[2], ks[3], H1, H2)
    w3, b3 = linear(ks[4], ks[5], H2, H3)
    # fc4 weight stored as a [1, 64] row (used as mul + lane-reduce).
    w4, b4 = linear(ks[6], ks[7], H3, 1, w_shape=(1, H3))
    return (w1, b1, w2, b2, w3, b3, w4, b4)


if __name__ == "__main__":
    key = jax.random.PRNGKey(0)
    kp, kx = jax.random.split(key)
    params = init_params(kp, D_IN)

    B = 8
    x = jax.random.normal(kx, (B, D_IN), dtype=jnp.float32)
    seed = jnp.array([0], dtype=jnp.int32)

    out = discriminator_forward(x, params, seed)
    jax.block_until_ready(out)
    assert out.shape == (B, 1) and out.dtype == jnp.float32
    assert bool(jnp.all(jnp.isfinite(out)))
    assert bool(jnp.all((out >= 0.0) & (out <= 1.0)))

    # bf16 matmuls vs f32 reference -> loose tolerance; dropout masks match
    # exactly (same integer hash on both sides).
    ref = discriminator_reference(x, params, seed)
    assert bool(jnp.max(jnp.abs(out - ref)) < 5e-2), "mismatch vs f32 reference"
    print("KERNEL_OK")
</pallas_src>

<mosaic_0001>
module attributes {stable_mosaic.version = 11 : i64} {
  func.func @disc_kernel(%arg0: i32, %arg1: memref<1xi32, #tpu.memory_space<smem>>, %arg2: memref<8x128xf32, #tpu.memory_space<vmem>>, %arg3: memref<128x256xbf16, #tpu.memory_space<vmem>>, %arg4: memref<1x256xf32, #tpu.memory_space<vmem>>, %arg5: memref<256x128xbf16, #tpu.memory_space<vmem>>, %arg6: memref<1x128xf32, #tpu.memory_space<vmem>>, %arg7: memref<128x64xbf16, #tpu.memory_space<vmem>>, %arg8: memref<1x64xf32, #tpu.memory_space<vmem>>, %arg9: memref<1x64xf32, #tpu.memory_space<vmem>>, %arg10: memref<1x1xf32, #tpu.memory_space<vmem>>, %arg11: memref<8x1xf32, #tpu.memory_space<vmem>>) attributes {dimension_semantics = [#tpu.dimension_semantics<parallel>], iteration_bounds = array<i64: 1>, scalar_prefetch = 1 : i64, scratch_operands = 0 : i64, tpu.core_type = #tpu.core_type<tc>, window_params = [{transform_indices = @transform_0, window_bounds = array<i64: 8, 128>}, {pipeline_mode = #tpu.pipeline_mode<synchronous>, transform_indices = @transform_1, window_bounds = array<i64: 128, 256>}, {pipeline_mode = #tpu.pipeline_mode<synchronous>, transform_indices = @transform_2, window_bounds = array<i64: 1, 256>}, {pipeline_mode = #tpu.pipeline_mode<synchronous>, transform_indices = @transform_3, window_bounds = array<i64: 256, 128>}, {pipeline_mode = #tpu.pipeline_mode<synchronous>, transform_indices = @transform_4, window_bounds = array<i64: 1, 128>}, {pipeline_mode = #tpu.pipeline_mode<synchronous>, transform_indices = @transform_5, window_bounds = array<i64: 128, 64>}, {pipeline_mode = #tpu.pipeline_mode<synchronous>, transform_indices = @transform_6, window_bounds = array<i64: 1, 64>}, {pipeline_mode = #tpu.pipeline_mode<synchronous>, transform_indices = @transform_7, window_bounds = array<i64: 1, 64>}, {pipeline_mode = #tpu.pipeline_mode<synchronous>, transform_indices = @transform_8, window_bounds = array<i64: 1, 1>}, {transform_indices = @transform_9, window_bounds = array<i64: 8, 1>}]} {
    %c0 = arith.constant 0 : index
    %0 = memref.load %arg1[%c0] : memref<1xi32, #tpu.memory_space<smem>>
    %c8_i32 = arith.constant 8 : i32
    %1 = arith.muli %arg0, %c8_i32 : i32
    %c0_0 = arith.constant 0 : index
    %c0_1 = arith.constant 0 : index
    %2 = vector.load %arg2[%c0_0, %c0_1] : memref<8x128xf32, #tpu.memory_space<vmem>>, vector<8x128xf32>
    %3 = arith.truncf %2 : vector<8x128xf32> to vector<8x128xbf16>
    %c0_2 = arith.constant 0 : index
    %c0_3 = arith.constant 0 : index
    %4 = vector.load %arg3[%c0_2, %c0_3] : memref<128x256xbf16, #tpu.memory_space<vmem>>, vector<128x256xbf16>
    %cst = arith.constant dense<0.000000e+00> : vector<8x256xf32>
    %5 = tpu.matmul %3, %4, %cst {dimension_numbers = #tpu.dot_dimension_numbers<[1], [0], [0], [1], [0, 0, 1, 1], [], []>} : vector<8x128xbf16>, vector<128x256xbf16>, vector<8x256xf32> -> vector<8x256xf32>
    %c0_4 = arith.constant 0 : index
    %c0_5 = arith.constant 0 : index
    %6 = vector.load %arg4[%c0_4, %c0_5] : memref<1x256xf32, #tpu.memory_space<vmem>>, vector<1x256xf32>
    %7 = vector.broadcast %6 : vector<1x256xf32> to vector<8x256xf32>
    %8 = arith.addf %5, %7 : vector<8x256xf32>
    %cst_6 = arith.constant 2.000000e-01 : f32
    %9 = vector.broadcast %cst_6 : f32 to vector<8x256xf32>
    %10 = arith.mulf %9, %8 : vector<8x256xf32>
    %11 = arith.maximumf %8, %10 : vector<8x256xf32>
    %12 = tpu.iota {dimensions = array<i32: 0>} : vector<8x1xi32>
    %13 = tpu.iota {dimensions = array<i32: 1>} : vector<1x256xi32>
    %14 = vector.broadcast %1 : i32 to vector<8x1xi32>
    %15 = arith.addi %12, %14 : vector<8x1xi32>
    %c-1640531527_i32 = arith.constant -1640531527 : i32
    %16 = vector.broadcast %c-1640531527_i32 : i32 to vector<8x1xi32>
    %17 = arith.muli %15, %16 : vector<8x1xi32>
    %18 = vector.broadcast %0 : i32 to vector<8x1xi32>
    %19 = arith.addi %17, %18 : vector<8x1xi32>
    %c16_i32 = arith.constant 16 : i32
    %20 = vector.broadcast %c16_i32 : i32 to vector<8x1xi32>
    %21 = arith.shrui %19, %20 : vector<8x1xi32>
    %22 = arith.xori %19, %21 : vector<8x1xi32>
    %c2146121005_i32 = arith.constant 2146121005 : i32
    %23 = vector.broadcast %c2146121005_i32 : i32 to vector<8x1xi32>
    %24 = arith.muli %22, %23 : vector<8x1xi32>
    %c15_i32 = arith.constant 15 : i32
    %25 = vector.broadcast %c15_i32 : i32 to vector<8x1xi32>
    %26 = arith.shrui %24, %25 : vector<8x1xi32>
    %27 = arith.xori %24, %26 : vector<8x1xi32>
    %c-2073254261_i32 = arith.constant -2073254261 : i32
    %28 = vector.broadcast %c-2073254261_i32 : i32 to vector<8x1xi32>
    %29 = arith.muli %27, %28 : vector<8x1xi32>
    %c16_i32_7 = arith.constant 16 : i32
    %30 = vector.broadcast %c16_i32_7 : i32 to vector<8x1xi32>
    %31 = arith.shrui %29, %30 : vector<8x1xi32>
    %32 = arith.xori %29, %31 : vector<8x1xi32>
    %c-2048144789_i32 = arith.constant -2048144789 : i32
    %33 = vector.broadcast %c-2048144789_i32 : i32 to vector<1x256xi32>
    %34 = arith.muli %13, %33 : vector<1x256xi32>
    %c1_i32 = arith.constant 1 : i32
    %35 = vector.broadcast %c1_i32 : i32 to vector<1x256xi32>
    %36 = arith.addi %34, %35 : vector<1x256xi32>
    %c16_i32_8 = arith.constant 16 : i32
    %37 = vector.broadcast %c16_i32_8 : i32 to vector<1x256xi32>
    %38 = arith.shrui %36, %37 : vector<1x256xi32>
    %39 = arith.xori %36, %38 : vector<1x256xi32>
    %c2146121005_i32_9 = arith.constant 2146121005 : i32
    %40 = vector.broadcast %c2146121005_i32_9 : i32 to vector<1x256xi32>
    %41 = arith.muli %39, %40 : vector<1x256xi32>
    %c15_i32_10 = arith.constant 15 : i32
    %42 = vector.broadcast %c15_i32_10 : i32 to vector<1x256xi32>
    %43 = arith.shrui %41, %42 : vector<1x256xi32>
    %44 = arith.xori %41, %43 : vector<1x256xi32>
    %c-2073254261_i32_11 = arith.constant -2073254261 : i32
    %45 = vector.broadcast %c-2073254261_i32_11 : i32 to vector<1x256xi32>
    %46 = arith.muli %44, %45 : vector<1x256xi32>
    %c16_i32_12 = arith.constant 16 : i32
    %47 = vector.broadcast %c16_i32_12 : i32 to vector<1x256xi32>
    %48 = arith.shrui %46, %47 : vector<1x256xi32>
    %49 = arith.xori %46, %48 : vector<1x256xi32>
    %50 = vector.broadcast %32 : vector<8x1xi32> to vector<8x256xi32>
    %51 = vector.broadcast %49 : vector<1x256xi32> to vector<8x256xi32>
    %52 = arith.addi %50, %51 : vector<8x256xi32>
    %c2146121005_i32_13 = arith.constant 2146121005 : i32
    %53 = vector.broadcast %c2146121005_i32_13 : i32 to vector<8x256xi32>
    %54 = arith.muli %52, %53 : vector<8x256xi32>
    %c1288490188_i32 = arith.constant 1288490188 : i32
    %55 = vector.broadcast %c1288490188_i32 : i32 to vector<8x256xi32>
    %56 = arith.cmpi uge, %54, %55 : vector<8x256xi32>
    %cst_14 = arith.constant 0.000000e+00 : f32
    %57 = vector.broadcast %cst_14 : f32 to vector<8x256xf32>
    %58 = arith.select %56, %11, %57 : vector<8x256xi1>, vector<8x256xf32>
    %59 = arith.truncf %58 : vector<8x256xf32> to vector<8x256xbf16>
    %c0_15 = arith.constant 0 : index
    %c0_16 = arith.constant 0 : index
    %60 = vector.load %arg5[%c0_15, %c0_16] : memref<256x128xbf16, #tpu.memory_space<vmem>>, vector<256x128xbf16>
    %cst_17 = arith.constant dense<0.000000e+00> : vector<8x128xf32>
    %61 = tpu.matmul %59, %60, %cst_17 {dimension_numbers = #tpu.dot_dimension_numbers<[1], [0], [0], [1], [0, 0, 1, 1], [], []>} : vector<8x256xbf16>, vector<256x128xbf16>, vector<8x128xf32> -> vector<8x128xf32>
    %c0_18 = arith.constant 0 : index
    %c0_19 = arith.constant 0 : index
    %62 = vector.load %arg6[%c0_18, %c0_19] : memref<1x128xf32, #tpu.memory_space<vmem>>, vector<1x128xf32>
    %63 = vector.broadcast %62 : vector<1x128xf32> to vector<8x128xf32>
    %64 = arith.addf %61, %63 : vector<8x128xf32>
    %cst_20 = arith.constant 2.000000e-01 : f32
    %65 = vector.broadcast %cst_20 : f32 to vector<8x128xf32>
    %66 = arith.mulf %65, %64 : vector<8x128xf32>
    %67 = arith.maximumf %64, %66 : vector<8x128xf32>
    %68 = tpu.iota {dimensions = array<i32: 0>} : vector<8x1xi32>
    %69 = tpu.iota {dimensions = array<i32: 1>} : vector<1x128xi32>
    %70 = vector.broadcast %1 : i32 to vector<8x1xi32>
    %71 = arith.addi %68, %70 : vector<8x1xi32>
    %c-1640531527_i32_21 = arith.constant -1640531527 : i32
    %72 = vector.broadcast %c-1640531527_i32_21 : i32 to vector<8x1xi32>
    %73 = arith.muli %71, %72 : vector<8x1xi32>
    %74 = vector.broadcast %0 : i32 to vector<8x1xi32>
    %75 = arith.addi %73, %74 : vector<8x1xi32>
    %c16_i32_22 = arith.constant 16 : i32
    %76 = vector.broadcast %c16_i32_22 : i32 to vector<8x1xi32>
    %77 = arith.shrui %75, %76 : vector<8x1xi32>
    %78 = arith.xori %75, %77 : vector<8x1xi32>
    %c2146121005_i32_23 = arith.constant 2146121005 : i32
    %79 = vector.broadcast %c2146121005_i32_23 : i32 to vector<8x1xi32>
    %80 = arith.muli %78, %79 : vector<8x1xi32>
    %c15_i32_24 = arith.constant 15 : i32
    %81 = vector.broadcast %c15_i32_24 : i32 to vector<8x1xi32>
    %82 = arith.shrui %80, %81 : vector<8x1xi32>
    %83 = arith.xori %80, %82 : vector<8x1xi32>
    %c-2073254261_i32_25 = arith.constant -2073254261 : i32
    %84 = vector.broadcast %c-2073254261_i32_25 : i32 to vector<8x1xi32>
    %85 = arith.muli %83, %84 : vector<8x1xi32>
    %c16_i32_26 = arith.constant 16 : i32
    %86 = vector.broadcast %c16_i32_26 : i32 to vector<8x1xi32>
    %87 = arith.shrui %85, %86 : vector<8x1xi32>
    %88 = arith.xori %85, %87 : vector<8x1xi32>
    %c-2048144789_i32_27 = arith.constant -2048144789 : i32
    %89 = vector.broadcast %c-2048144789_i32_27 : i32 to vector<1x128xi32>
    %90 = arith.muli %69, %89 : vector<1x128xi32>
    %c2_i32 = arith.constant 2 : i32
    %91 = vector.broadcast %c2_i32 : i32 to vector<1x128xi32>
    %92 = arith.addi %90, %91 : vector<1x128xi32>
    %c16_i32_28 = arith.constant 16 : i32
    %93 = vector.broadcast %c16_i32_28 : i32 to vector<1x128xi32>
    %94 = arith.shrui %92, %93 : vector<1x128xi32>
    %95 = arith.xori %92, %94 : vector<1x128xi32>
    %c2146121005_i32_29 = arith.constant 2146121005 : i32
    %96 = vector.broadcast %c2146121005_i32_29 : i32 to vector<1x128xi32>
    %97 = arith.muli %95, %96 : vector<1x128xi32>
    %c15_i32_30 = arith.constant 15 : i32
    %98 = vector.broadcast %c15_i32_30 : i32 to vector<1x128xi32>
    %99 = arith.shrui %97, %98 : vector<1x128xi32>
    %100 = arith.xori %97, %99 : vector<1x128xi32>
    %c-2073254261_i32_31 = arith.constant -2073254261 : i32
    %101 = vector.broadcast %c-2073254261_i32_31 : i32 to vector<1x128xi32>
    %102 = arith.muli %100, %101 : vector<1x128xi32>
    %c16_i32_32 = arith.constant 16 : i32
    %103 = vector.broadcast %c16_i32_32 : i32 to vector<1x128xi32>
    %104 = arith.shrui %102, %103 : vector<1x128xi32>
    %105 = arith.xori %102, %104 : vector<1x128xi32>
    %106 = vector.broadcast %88 : vector<8x1xi32> to vector<8x128xi32>
    %107 = vector.broadcast %105 : vector<1x128xi32> to vector<8x128xi32>
    %108 = arith.addi %106, %107 : vector<8x128xi32>
    %c2146121005_i32_33 = arith.constant 2146121005 : i32
    %109 = vector.broadcast %c2146121005_i32_33 : i32 to vector<8x128xi32>
    %110 = arith.muli %108, %109 : vector<8x128xi32>
    %c1288490188_i32_34 = arith.constant 1288490188 : i32
    %111 = vector.broadcast %c1288490188_i32_34 : i32 to vector<8x128xi32>
    %112 = arith.cmpi uge, %110, %111 : vector<8x128xi32>
    %cst_35 = arith.constant 0.000000e+00 : f32
    %113 = vector.broadcast %cst_35 : f32 to vector<8x128xf32>
    %114 = arith.select %112, %67, %113 : vector<8x128xi1>, vector<8x128xf32>
    %115 = arith.truncf %114 : vector<8x128xf32> to vector<8x128xbf16>
    %c0_36 = arith.constant 0 : index
    %c0_37 = arith.constant 0 : index
    %116 = vector.load %arg7[%c0_36, %c0_37] : memref<128x64xbf16, #tpu.memory_space<vmem>>, vector<128x64xbf16>
    %cst_38 = arith.constant dense<0.000000e+00> : vector<8x64xf32>
    %117 = tpu.matmul %115, %116, %cst_38 {dimension_numbers = #tpu.dot_dimension_numbers<[1], [0], [0], [1], [0, 0, 1, 1], [], []>} : vector<8x128xbf16>, vector<128x64xbf16>, vector<8x64xf32> -> vector<8x64xf32>
    %c0_39 = arith.constant 0 : index
    %c0_40 = arith.constant 0 : index
    %118 = vector.load %arg8[%c0_39, %c0_40] : memref<1x64xf32, #tpu.memory_space<vmem>>, vector<1x64xf32>
    %119 = vector.broadcast %118 : vector<1x64xf32> to vector<8x64xf32>
    %120 = arith.addf %117, %119 : vector<8x64xf32>
    %cst_41 = arith.constant 2.000000e-01 : f32
    %121 = vector.broadcast %cst_41 : f32 to vector<8x64xf32>
    %122 = arith.mulf %121, %120 : vector<8x64xf32>
    %123 = arith.maximumf %120, %122 : vector<8x64xf32>
    %124 = tpu.iota {dimensions = array<i32: 0>} : vector<8x1xi32>
    %125 = tpu.iota {dimensions = array<i32: 1>} : vector<1x64xi32>
    %126 = vector.broadcast %1 : i32 to vector<8x1xi32>
    %127 = arith.addi %124, %126 : vector<8x1xi32>
    %c-1640531527_i32_42 = arith.constant -1640531527 : i32
    %128 = vector.broadcast %c-1640531527_i32_42 : i32 to vector<8x1xi32>
    %129 = arith.muli %127, %128 : vector<8x1xi32>
    %130 = vector.broadcast %0 : i32 to vector<8x1xi32>
    %131 = arith.addi %129, %130 : vector<8x1xi32>
    %c16_i32_43 = arith.constant 16 : i32
    %132 = vector.broadcast %c16_i32_43 : i32 to vector<8x1xi32>
    %133 = arith.shrui %131, %132 : vector<8x1xi32>
    %134 = arith.xori %131, %133 : vector<8x1xi32>
    %c2146121005_i32_44 = arith.constant 2146121005 : i32
    %135 = vector.broadcast %c2146121005_i32_44 : i32 to vector<8x1xi32>
    %136 = arith.muli %134, %135 : vector<8x1xi32>
    %c15_i32_45 = arith.constant 15 : i32
    %137 = vector.broadcast %c15_i32_45 : i32 to vector<8x1xi32>
    %138 = arith.shrui %136, %137 : vector<8x1xi32>
    %139 = arith.xori %136, %138 : vector<8x1xi32>
    %c-2073254261_i32_46 = arith.constant -2073254261 : i32
    %140 = vector.broadcast %c-2073254261_i32_46 : i32 to vector<8x1xi32>
    %141 = arith.muli %139, %140 : vector<8x1xi32>
    %c16_i32_47 = arith.constant 16 : i32
    %142 = vector.broadcast %c16_i32_47 : i32 to vector<8x1xi32>
    %143 = arith.shrui %141, %142 : vector<8x1xi32>
    %144 = arith.xori %141, %143 : vector<8x1xi32>
    %c-2048144789_i32_48 = arith.constant -2048144789 : i32
    %145 = vector.broadcast %c-2048144789_i32_48 : i32 to vector<1x64xi32>
    %146 = arith.muli %125, %145 : vector<1x64xi32>
    %c3_i32 = arith.constant 3 : i32
    %147 = vector.broadcast %c3_i32 : i32 to vector<1x64xi32>
    %148 = arith.addi %146, %147 : vector<1x64xi32>
    %c16_i32_49 = arith.constant 16 : i32
    %149 = vector.broadcast %c16_i32_49 : i32 to vector<1x64xi32>
    %150 = arith.shrui %148, %149 : vector<1x64xi32>
    %151 = arith.xori %148, %150 : vector<1x64xi32>
    %c2146121005_i32_50 = arith.constant 2146121005 : i32
    %152 = vector.broadcast %c2146121005_i32_50 : i32 to vector<1x64xi32>
    %153 = arith.muli %151, %152 : vector<1x64xi32>
    %c15_i32_51 = arith.constant 15 : i32
    %154 = vector.broadcast %c15_i32_51 : i32 to vector<1x64xi32>
    %155 = arith.shrui %153, %154 : vector<1x64xi32>
    %156 = arith.xori %153, %155 : vector<1x64xi32>
    %c-2073254261_i32_52 = arith.constant -2073254261 : i32
    %157 = vector.broadcast %c-2073254261_i32_52 : i32 to vector<1x64xi32>
    %158 = arith.muli %156, %157 : vector<1x64xi32>
    %c16_i32_53 = arith.constant 16 : i32
    %159 = vector.broadcast %c16_i32_53 : i32 to vector<1x64xi32>
    %160 = arith.shrui %158, %159 : vector<1x64xi32>
    %161 = arith.xori %158, %160 : vector<1x64xi32>
    %162 = vector.broadcast %144 : vector<8x1xi32> to vector<8x64xi32>
    %163 = vector.broadcast %161 : vector<1x64xi32> to vector<8x64xi32>
    %164 = arith.addi %162, %163 : vector<8x64xi32>
    %c2146121005_i32_54 = arith.constant 2146121005 : i32
    %165 = vector.broadcast %c2146121005_i32_54 : i32 to vector<8x64xi32>
    %166 = arith.muli %164, %165 : vector<8x64xi32>
    %c1288490188_i32_55 = arith.constant 1288490188 : i32
    %167 = vector.broadcast %c1288490188_i32_55 : i32 to vector<8x64xi32>
    %168 = arith.cmpi uge, %166, %167 : vector<8x64xi32>
    %cst_56 = arith.constant 0.000000e+00 : f32
    %169 = vector.broadcast %cst_56 : f32 to vector<8x64xf32>
    %170 = arith.select %168, %123, %169 : vector<8x64xi1>, vector<8x64xf32>
    %c0_57 = arith.constant 0 : index
    %c0_58 = arith.constant 0 : index
    %171 = vector.load %arg9[%c0_57, %c0_58] : memref<1x64xf32, #tpu.memory_space<vmem>>, vector<1x64xf32>
    %172 = vector.broadcast %171 : vector<1x64xf32> to vector<8x64xf32>
    %173 = arith.mulf %170, %172 : vector<8x64xf32>
    %cst_59 = arith.constant dense<0.000000e+00> : vector<8xf32>
    %174 = vector.multi_reduction <add>, %173, %cst_59 [1] : vector<8x64xf32> to vector<8xf32>
    %175 = vector.shape_cast %174 : vector<8xf32> to vector<8x1xf32>
    %c0_60 = arith.constant 0 : index
    %c0_61 = arith.constant 0 : index
    %176 = vector.load %arg10[%c0_60, %c0_61] : memref<1x1xf32, #tpu.memory_space<vmem>>, vector<1x1xf32>
    %177 = vector.broadcast %176 : vector<1x1xf32> to vector<8x1xf32>
    %178 = arith.addf %175, %177 : vector<8x1xf32>
    %cst_62 = arith.constant 0.000000e+00 : f32
    %179 = vector.broadcast %cst_62 : f32 to vector<8x1xf32>
    %180 = arith.subf %179, %178 : vector<8x1xf32>
    %181 = math.exp %180 : vector<8x1xf32>
    %cst_63 = arith.constant 1.000000e+00 : f32
    %182 = vector.broadcast %cst_63 : f32 to vector<8x1xf32>
    %183 = arith.addf %182, %181 : vector<8x1xf32>
    %cst_64 = arith.constant 1.000000e+00 : f32
    %184 = vector.broadcast %cst_64 : f32 to vector<8x1xf32>
    %185 = arith.divf %184, %183 : vector<8x1xf32>
    %c0_65 = arith.constant 0 : index
    %c0_66 = arith.constant 0 : index
    %186 = vector.load %arg11[%c0_65, %c0_66] : memref<8x1xf32, #tpu.memory_space<vmem>>, vector<8x1xf32>
    tpu.vector_store %arg11[%c0_65, %c0_66], %185 {strides = array<i32>} : memref<8x1xf32, #tpu.memory_space<vmem>>, vector<8x1xf32>,
    return
  }
  func.func @transform_0(%arg0: i32, %arg1: memref<1xi32, #tpu.memory_space<smem>>) -> (i32, i32) {
    %c0_i32 = arith.constant 0 : i32
    %c0_i32_0 = arith.constant 0 : i32
    return %arg0, %c0_i32 : i32, i32
  }
  func.func @transform_1(%arg0: i32, %arg1: memref<1xi32, #tpu.memory_space<smem>>) -> (i32, i32) {
    %c0_i32 = arith.constant 0 : i32
    %c0_i32_0 = arith.constant 0 : i32
    %c0_i32_1 = arith.constant 0 : i32
    return %c0_i32, %c0_i32_0 : i32, i32
  }
  func.func @transform_2(%arg0: i32, %arg1: memref<1xi32, #tpu.memory_space<smem>>) -> (i32, i32) {
    %c0_i32 = arith.constant 0 : i32
    %c0_i32_0 = arith.constant 0 : i32
    %c0_i32_1 = arith.constant 0 : i32
    return %c0_i32, %c0_i32_0 : i32, i32
  }
  func.func @transform_3(%arg0: i32, %arg1: memref<1xi32, #tpu.memory_space<smem>>) -> (i32, i32) {
    %c0_i32 = arith.constant 0 : i32
    %c0_i32_0 = arith.constant 0 : i32
    %c0_i32_1 = arith.constant 0 : i32
    return %c0_i32, %c0_i32_0 : i32, i32
  }
  func.func @transform_4(%arg0: i32, %arg1: memref<1xi32, #tpu.memory_space<smem>>) -> (i32, i32) {
    %c0_i32 = arith.constant 0 : i32
    %c0_i32_0 = arith.constant 0 : i32
    %c0_i32_1 = arith.constant 0 : i32
    return %c0_i32, %c0_i32_0 : i32, i32
  }
  func.func @transform_5(%arg0: i32, %arg1: memref<1xi32, #tpu.memory_space<smem>>) -> (i32, i32) {
    %c0_i32 = arith.constant 0 : i32
    %c0_i32_0 = arith.constant 0 : i32
    %c0_i32_1 = arith.constant 0 : i32
    return %c0_i32, %c0_i32_0 : i32, i32
  }
  func.func @transform_6(%arg0: i32, %arg1: memref<1xi32, #tpu.memory_space<smem>>) -> (i32, i32) {
    %c0_i32 = arith.constant 0 : i32
    %c0_i32_0 = arith.constant 0 : i32
    %c0_i32_1 = arith.constant 0 : i32
    return %c0_i32, %c0_i32_0 : i32, i32
  }
  func.func @transform_7(%arg0: i32, %arg1: memref<1xi32, #tpu.memory_space<smem>>) -> (i32, i32) {
    %c0_i32 = arith.constant 0 : i32
    %c0_i32_0 = arith.constant 0 : i32
    %c0_i32_1 = arith.constant 0 : i32
    return %c0_i32, %c0_i32_0 : i32, i32
  }
  func.func @transform_8(%arg0: i32, %arg1: memref<1xi32, #tpu.memory_space<smem>>) -> (i32, i32) {
    %c0_i32 = arith.constant 0 : i32
    %c0_i32_0 = arith.constant 0 : i32
    %c0_i32_1 = arith.constant 0 : i32
    return %c0_i32, %c0_i32_0 : i32, i32
  }
  func.func @transform_9(%arg0: i32, %arg1: memref<1xi32, #tpu.memory_space<smem>>) -> (i32, i32) {
    %c0_i32 = arith.constant 0 : i32
    %c0_i32_0 = arith.constant 0 : i32
    return %arg0, %c0_i32 : i32, i32
  }
}

</mosaic_0001>

<bundles_post_ra>
// kernel: tpu_custom_call.1
= control target key start
LH: loop header
LB: loop body
LE: loop exit
PB: predicated region body
PF: predicated region fallthrough
CT: control target
= control target key end

     0   :  { %s990_s0 = inlined_call_operand.<no memory space> [shape: s32[1], index: 0, kind: input, shape index: {}]   ;;  %s991_s1 = inlined_call_operand.vmem [shape: f32[8,128], index: 1, kind: input, shape index: {}]   ;;  %s992_s2 = inlined_call_operand.hbm [shape: bf16[128,256], index: 2, kind: input, shape index: {}]   ;;  %s993_s3 = inlined_call_operand.vmem [shape: f32[1,256], index: 3, kind: input, shape index: {}]   ;;  %s994_s4 = inlined_call_operand.hbm [shape: bf16[256,128], index: 4, kind: input, shape index: {}]   ;;  %s995_s5 = inlined_call_operand.vmem [shape: f32[1,128], index: 5, kind: input, shape index: {}]   ;;  %s996_s6 = inlined_call_operand.vmem [shape: bf16[128,64], index: 6, kind: input, shape index: {}]   ;;  %s997_s7 = inlined_call_operand.vmem [shape: f32[1,64], index: 7, kind: input, shape index: {}]   ;;  %s998_s8 = inlined_call_operand.vmem [shape: f32[1,64], index: 8, kind: input, shape index: {}]   ;;  %s999_s9 = inlined_call_operand.<no memory space> [shape: f32[1,1], index: 9, kind: input, shape index: {}]   ;;  %s1000_s10 = inlined_call_operand.vmem [shape: f32[8,1], index: 10, kind: output, shape index: {}]  }
   0x1   :  { %v16_v0 = vstv %s999_s9 }
   0x2   :  { %17 = vst [vmem:[#allocation4] sm:$0x1] %v16_v0 }
   0x3   :  { %18 = vsyncpa [#allocation6], 0 }
   0x4   :  { %19 = vsyncpa [#allocation8], 0  ;;  %s834_s15 = smov [#allocation5]   ;;  %s786_s19 = scalar_lea.hbm %s992_s2, 2048 }
   0x5   :  { %s27_s16 = sshll.u32 %s834_s15, 4  ;;  %p787_p0 = scmp.ne.s32.totalorder %s992_s2, %s786_s19  ;;  %s28_s16 = int_to_ptr.vmem [resolvable:$true] %s27_s16 }
   0x6   :  { %p790_p1 = scmp.lt.u32.totalorder %s786_s19, %s992_s2 }
   0x8   :  { %p792_p2 = pnand %p790_p1, %p787_p0 }
   0xa   :  { %795 = shalt.err (!%p792_p2)
}
   0xb   :  { %s796_s9 = scalar_lea.vmem %s28_s16, 2048  ;;  %p801_p4 = scmp.lt.s32.totalorder %s28_s16, %s28_s16 }
   0xc   :  { %p797_p3 = scmp.ne.s32.totalorder %s28_s16, %s796_s9  ;;  %p802_p5 = scmp.lt.s32.totalorder %s796_s9, %s796_s9 }
   0xe   :  { %p803_p6 = por %p802_p5, %p801_p4 }
  0x10   :  { %p804_p7 = pnand %p803_p6, %p797_p3 }
  0x12   :  { %807 = shalt.err (!%p804_p7)
}
  0x13   :  { %s835_s24 = smov 128   ;;  %s836_s25 = smov 8  }
  0x14   :  { %33 = dma.hbm_to_vmem [thread:$0]  %s992_s2, 2048, %s28_s16, [#allocation6], %s835_s24, %s835_s24, %s836_s25  }
  0x15   :  { %s837_s28 = smov [#allocation7]   ;;  %s808_s12 = scalar_lea.hbm %s994_s4, 2048 }
  0x16   :  { %s41_s29 = sshll.u32 %s837_s28, 4  ;;  %p809_p8 = scmp.ne.s32.totalorder %s994_s4, %s808_s12  ;;  %s42_s29 = int_to_ptr.vmem [resolvable:$true] %s41_s29 }
  0x17   :  { %p812_p9 = scmp.lt.u32.totalorder %s808_s12, %s994_s4 }
  0x19   :  { %p814_p10 = pnand %p812_p9, %p809_p8 }
  0x1b   :  { %817 = shalt.err (!%p814_p10)
}
  0x1c   :  { %s818_s18 = scalar_lea.vmem %s42_s29, 2048  ;;  %p823_p12 = scmp.lt.s32.totalorder %s42_s29, %s42_s29 }
  0x1d   :  { %p819_p11 = scmp.ne.s32.totalorder %s42_s29, %s818_s18  ;;  %p824_p13 = scmp.lt.s32.totalorder %s818_s18, %s818_s18 }
  0x1f   :  { %p825_p0 = por %p824_p13, %p823_p12 }
  0x21   :  { %p826_p1 = pnand %p825_p0, %p819_p11 }
  0x23   :  { %829 = shalt.err (!%p826_p1)
}
  0x24   :  { %s838_s2 = smov 64   ;;  %s839_s16 = smov 4  }
  0x25   :  { %47 = dma.hbm_to_vmem [thread:$0]  %s994_s4, 2048, %s42_s29, [#allocation8], %s838_s2, %s838_s2, %s839_s16  }
  0x26   :  { %830 = dma.done.wait [#allocation6], 2048  }
  0x27   :  { %831 = vsyncadd [#allocation6], 4294965248 }
  0x28   :  { %832 = dma.done.wait [#allocation8], 2048  }
  0x29   :  { %833 = vsyncadd [#allocation8], 4294965248  ;;  %v840_v1 = vmov 0   ;;  %v734_v2 = vld [vmem:[#allocation5 + $0x4] ss:$8 sps:$4 sm:$0xff]   ;;  %v762_v16 = vld [vmem:[#allocation7 + $0x50] sm:$0xff]   ;;  %v87_v42 = vlaneseq  ;;  %v230_v48 = vstv %s990_s0 }
  0x2a   :  { %209 = vmatprep.mubr.bf16.mxu0 %v840_v1  ;;  %v736_v3 = vld [vmem:[#allocation5] ss:$8 sps:$4 sm:$0xff]   ;;  %177 = vmatprep.subr.bf16.mxu0 %v734_v2  ;;  %v737_v4 = vld [vmem:[#allocation5 + $0x14] ss:$8 sps:$4 sm:$0xff]   ;;  %v739_v5 = vld [vmem:[#allocation5 + $0x10] ss:$8 sps:$4 sm:$0xff]  }
  0x2b   :  { %178 = vmatpush1.bf16.msra.mxu0 %v736_v3  ;;  %v740_v6 = vld [vmem:[#allocation5 + $0x24] ss:$8 sps:$4 sm:$0xff]   ;;  %v742_v7 = vld [vmem:[#allocation5 + $0x20] ss:$8 sps:$4 sm:$0xff]   ;;  %v743_v8 = vld [vmem:[#allocation5 + $0x34] ss:$8 sps:$4 sm:$0xff]  }
  0x2c   :  { %179 = vmatprep.subr.bf16.mxu0 %v737_v4  ;;  %v745_v9 = vld [vmem:[#allocation5 + $0x30] ss:$8 sps:$4 sm:$0xff]   ;;  %v746_v10 = vld [vmem:[#allocation5 + $0x44] ss:$8 sps:$4 sm:$0xff]   ;;  %v748_v13 = vld [vmem:[#allocation5 + $0x40] ss:$8 sps:$4 sm:$0xff]  }
  0x2d   :  { %v758_v11 = vld [vmem:[#allocation7 + $0x40] sm:$0xff]   ;;  %v760_v14 = vld [vmem:[#allocation7 + $0x48] sm:$0xff]   ;;  %v749_v17 = vld [vmem:[#allocation5 + $0x54] ss:$8 sps:$4 sm:$0xff]   ;;  %v841_v37 = vmov 0.0   ;;  %v225_v43 = vand.u32 127, %v87_v42 }
  0x2e   :  { %v759_v12 = vld [vmem:[#allocation7] sm:$0xff]   ;;  %674 = vmatprep.subr.bf16.mxu1 %v758_v11  ;;  %v761_v15 = vld [vmem:[#allocation7 + $0x8] sm:$0xff]   ;;  %v751_v18 = vld [vmem:[#allocation5 + $0x50] ss:$8 sps:$4 sm:$0xff]   ;;  %v88_v44 = vshrl.u32 %v87_v42, 7  ;;  %vm842_vm4 = vmmov 0  }
  0x2f   :  { %180 = vmatpush1.bf16.msra.mxu0 %v739_v5  ;;  %675 = vmatpush3.bf16.msra.mxu1 %v759_v12  ;;  %v763_v19 = vld [vmem:[#allocation7 + $0x10] sm:$0xff]   ;;  %v764_v20 = vld [vmem:[#allocation7 + $0x58] sm:$0xff]   ;;  %v752_v21 = vld [vmem:[#allocation5 + $0x64] ss:$8 sps:$4 sm:$0xff]   ;;  %v226_v45 = vadd.s32 128, %v225_v43  ;;  %vm595_vm8 = vcmask 523264  }
  0x30   :  { %181 = vmatprep.subr.bf16.mxu0 %v740_v6  ;;  %676 = vmatprep.subr.bf16.mxu1 %v760_v14  ;;  %v754_v22 = vld [vmem:[#allocation5 + $0x60] ss:$8 sps:$4 sm:$0xff]   ;;  %v765_v23 = vld [vmem:[#allocation7 + $0x18] sm:$0xff]   ;;  %v770_v32 = vld [vmem:[#allocation7 + $0x70] sm:$0xff]   ;;  %v229_v46 = vmul.u32 2654435769, %v88_v44 }
  0x31   :  { %v755_v24 = vld [vmem:[#allocation5 + $0x74] ss:$8 sps:$4 sm:$0xff]   ;;  %v766_v25 = vld [vmem:[#allocation7 + $0x60] sm:$0xff]   ;;  %v757_v27 = vld [vmem:[#allocation5 + $0x70] ss:$8 sps:$4 sm:$0xff]   ;;  %v89_v12 = vsub.s32 0, %v88_v44 }
  0x32   :  { %v767_v26 = vld [vmem:[#allocation7 + $0x20] sm:$0xff]   ;;  %v768_v29 = vld [vmem:[#allocation7 + $0x68] sm:$0xff]   ;;  %v771_v33 = vld [vmem:[#allocation7 + $0x30] sm:$0xff]   ;;  %v241_v47 = vmul.u32 2246822507, %v226_v45  ;;  %v231_v50 = vadd.s32 %v230_v48, %v229_v46  ;;  %vm613_vm9 = vcmask 7168  }
  0x33   :  { %182 = vmatpush1.bf16.msra.mxu0 %v742_v7  ;;  %677 = vmatpush3.bf16.msra.mxu1 %v761_v15  ;;  %v67_v28 = vld [vmem:[%s991_s1] sm:$0xff]  ;;  %v769_v31 = vld [vmem:[#allocation7 + $0x28] sm:$0xff]   ;;  %v777_v40 = vld [vmem:[%s996_s6 + $0x18] sm:$0xff]   ;;  %v952_v49 = vmul.u32 2246822507, %v225_v43  ;;  %v93_v15 = vsub.s32 1, %v88_v44 }
  0x34   :  { %183 = vmatprep.subr.bf16.mxu0 %v743_v8  ;;  %678 = vmatprep.subr.bf16.mxu1 %v762_v16  ;;  %v68_v30 = vpack.c.bf16 %v67_v28, %v67_v28  ;;  %v772_v34 = vld [vmem:[#allocation7 + $0x78] sm:$0xff]   ;;  %v775_v38 = vld [vmem:[%s996_s6 + $0x8] sm:$0xff]   ;;  %v776_v39 = vld [vmem:[%s996_s6 + $0x10] sm:$0xff]   ;;  %v243_v51 = vadd.s32 1, %v241_v47  ;;  %v232_v53 = vshrl.u32 %v231_v50, 16 }
  0x35   :  { %v773_v35 = vld [vmem:[#allocation7 + $0x38] sm:$0xff]   ;;  %v242_v52 = vadd.s32 1, %v952_v49 }
  0x36   :  { %v774_v36 = vld [vmem:[%s996_s6] sm:$0xff]   ;;  %v245_v54 = vshrl.u32 %v243_v51, 16  ;;  %v233_v56 = vxor.u32 %v232_v53, %v231_v50 }
  0x37   :  { %184 = vmatpush1.bf16.msra.mxu0 %v745_v9  ;;  %679 = vmatpush3.bf16.msra.mxu1 %v763_v19  ;;  %v778_v41 = vld [vmem:[%s996_s6 + $0x20] sm:$0xff]   ;;  %v244_v55 = vshrl.u32 %v242_v52, 16 }
  0x38   :  { %185 = vmatprep.subr.bf16.mxu0 %v746_v10  ;;  %680 = vmatprep.subr.bf16.mxu1 %v764_v20  ;;  %v247_v57 = vxor.u32 %v245_v54, %v243_v51  ;;  %v234_v59 = vmul.u32 2146121005, %v233_v56  ;;  %v85_v14 = vld [vmem:[%s993_s3] sm:$0x3] }
  0x39   :  { %v246_v58 = vxor.u32 %v244_v55, %v242_v52  ;;  %v94_v19 = vrot.slane %v85_v14, %v93_v15  ;;  %v637_v50 = vld [vmem:[%s995_s5] ss:$0 sm:$0xff] }
  0x3a   :  { %v249_v60 = vmul.u32 2146121005, %v247_v57  ;;  %v235_v62 = vshrl.u32 %v234_v59, 15 }
  0x3b   :  { %186 = vmatpush1.bf16.msra.mxu0 %v748_v13  ;;  %681 = vmatpush3.bf16.msra.mxu1 %v765_v23  ;;  %v248_v61 = vmul.u32 2146121005, %v246_v58 }
  0x3c   :  { %187 = vmatprep.subr.bf16.mxu0 %v749_v17  ;;  %682 = vmatprep.subr.bf16.mxu1 %v766_v25  ;;  %v251_v63 = vshrl.u32 %v249_v60, 15  ;;  %v236_v1 = vxor.u32 %v235_v62, %v234_v59  ;;  %v90_v17 = vrot.slane %v85_v14, %v89_v12  ;;  %v574_v59 = vadd.s32 3, %v952_v49  ;;  %v672_v14 = vld [vmem:[%s998_s8] ss:$0 sm:$0xff] }
  0x3d   :  { %v250_v0 = vshrl.u32 %v248_v61, 15 }
  0x3e   :  { %v253_v2 = vxor.u32 %v251_v63, %v249_v60  ;;  %v237_v4 = vmul.u32 2221713035, %v236_v1  ;;  %v575_v60 = vshrl.u32 %v574_v59, 16 }
  0x3f   :  { %188 = vmatpush1.bf16.msra.mxu0 %v751_v18  ;;  %683 = vmatpush3.bf16.msra.mxu1 %v767_v26  ;;  %v252_v3 = vxor.u32 %v250_v0, %v248_v61 }
  0x40   :  { %189 = vmatprep.subr.bf16.mxu0 %v752_v21  ;;  %684 = vmatprep.subr.bf16.mxu1 %v768_v29  ;;  %v255_v5 = vmul.u32 2221713035, %v253_v2  ;;  %v238_v7 = vshrl.u32 %v237_v4, 16  ;;  %v576_v61 = vxor.u32 %v575_v60, %v574_v59 }
  0x41   :  { %v254_v6 = vmul.u32 2221713035, %v252_v3 }
  0x42   :  { %v257_v8 = vshrl.u32 %v255_v5, 16  ;;  %v955_v10 = vxor.u32 %v238_v7, %v237_v4  ;;  %v577_v62 = vmul.u32 2146121005, %v576_v61 }
  0x43   :  { %190 = vmatpush1.bf16.msra.mxu0 %v754_v22  ;;  %685 = vmatpush3.bf16.msra.mxu1 %v769_v31  ;;  %v256_v9 = vshrl.u32 %v254_v6, 16 }
  0x44   :  { %191 = vmatprep.subr.bf16.mxu0 %v755_v24  ;;  %686 = vmatprep.subr.bf16.mxu1 %v770_v32  ;;  %v259_v11 = vxor.u32 %v257_v8, %v255_v5  ;;  %v578_v63 = vshrl.u32 %v577_v62, 15  ;;  %v660_v5 = vld [vmem:[%s997_s7] ss:$0 sm:$0xff] }
  0x45   :  { %v258_v13 = vxor.u32 %v256_v9, %v254_v6 }
  0x46   :  { %v261_v16 = vadd.s32 %v259_v11, %v955_v10  ;;  %v579_v0 = vxor.u32 %v578_v63, %v577_v62 }
  0x47   :  { %192 = vmatpush1.bf16.msra.mxu0 %v757_v27  ;;  %687 = vmatpush3.bf16.msra.mxu1 %v771_v33  ;;  %v260_v18 = vadd.s32 %v258_v13, %v955_v10 }
  0x48   :  { %688 = vmatprep.subr.bf16.mxu1 %v772_v34  ;;  %705 = vmatprep.subr.bf16.mxu0 %v841_v37  ;;  %v263_v21 = vmul.u32 2146121005, %v261_v16  ;;  %v779_v34 = vld [vmem:[%s996_s6 + $0x28] sm:$0xff]   ;;  %v580_v1 = vmul.u32 2221713035, %v579_v0 }
  0x49   :  { %v262_v24 = vmul.u32 2146121005, %v260_v18 }
  0x4a   :  { %210 = vmatmul.mubr.bf16.vlgmr.msra.gmra.mrb[0].mxu0 %v68_v30  ;;  %vm265_vm0 = vcmp.ge.u32.totalorder %v263_v21, 1288490188  ;;  %v581_v2 = vshrl.u32 %v580_v1, 16 }
  0x4b   :  { %689 = vmatpush3.bf16.msra.mxu1 %v773_v35  ;;  %706 = vmatpush3.bf16.msra.mxu0 %v774_v36  ;;  %vm264_vm1 = vcmp.ge.u32.totalorder %v262_v24, 1288490188  ;;  %vm654_vm2 = vmpackc.low %vm265_vm0, %vm265_vm0  ;;  %v780_v35 = vld [vmem:[%s996_s6 + $0x30] sm:$0xff]   ;;  %v781_v36 = vld [vmem:[%s996_s6 + $0x38] sm:$0xff]  }
  0x4c   :  { %707 = vmatprep.subr.bf16.mxu0 %v841_v37  ;;  %vm657_vm3 = vmpackc.low %vm264_vm1, %vm264_vm1  ;;  %721 = vmatprep.mubr.msk.bf16.mxu0 %vm842_vm4, %v841_v37  ;;  %v582_v3 = vxor.u32 %v581_v2, %v580_v1 }
  0x4e   :  { %v583_v4 = vadd.s32 %v582_v3, %v955_v10 }
  0x4f   :  { %708 = vmatpush3.bf16.msra.mxu0 %v775_v38  ;;  %v447_v38 = vadd.s32 2, %v952_v49 }
  0x50   :  { %709 = vmatprep.subr.bf16.mxu0 %v841_v37  ;;  %v584_v7 = vmul.u32 2146121005, %v583_v4 }
  0x52   :  { %vm585_vm7 = vcmp.ge.u32.totalorder %v584_v7, 1288490188 }
  0x53   :  { %710 = vmatpush3.bf16.msra.mxu0 %v776_v39  ;;  %v448_v39 = vshrl.u32 %v447_v38, 16 }
  0x54   :  { %711 = vmatprep.subr.bf16.mxu0 %v841_v37 }
  0x57   :  { %712 = vmatpush3.bf16.msra.mxu0 %v777_v40  ;;  %v449_v40 = vxor.u32 %v448_v39, %v447_v38 }
  0x58   :  { %713 = vmatprep.subr.bf16.mxu0 %v841_v37 }
  0x5b   :  { %714 = vmatpush3.bf16.msra.mxu0 %v778_v41  ;;  %v450_v41 = vmul.u32 2146121005, %v449_v40 }
  0x5c   :  { %715 = vmatprep.subr.bf16.mxu0 %v841_v37 }
  0x5d   :  { %v451_v42 = vshrl.u32 %v450_v41, 15 }
  0x5f   :  { %716 = vmatpush3.bf16.msra.mxu0 %v779_v34  ;;  %v452_v43 = vxor.u32 %v451_v42, %v450_v41 }
  0x60   :  { %717 = vmatprep.subr.bf16.mxu0 %v841_v37 }
  0x61   :  { %v453_v44 = vmul.u32 2221713035, %v452_v43 }
  0x63   :  { %718 = vmatpush3.bf16.msra.mxu0 %v780_v35  ;;  %v454_v45 = vshrl.u32 %v453_v44, 16 }
  0x64   :  { %719 = vmatprep.subr.bf16.mxu0 %v841_v37 }
  0x65   :  { %v455_v46 = vxor.u32 %v454_v45, %v453_v44 }
  0x67   :  { %720 = vmatpush3.bf16.msra.mxu0 %v781_v36  ;;  %v456_v47 = vadd.s32 %v455_v46, %v955_v10 }
  0x69   :  { %v457_v53 = vmul.u32 2146121005, %v456_v47 }
  0x6b   :  { %vm458_vm5 = vcmp.ge.u32.totalorder %v457_v53, 1288490188 }
  0x6c   :  { %vm669_vm6 = vmpackc.low %vm458_vm5, %vm458_vm5 }
 0x11d   :  { %v211_v20 = vpop.f32.mrb[0].mxu0 }
 0x11e   :  { %v212_v22 = vadd.f32 %v211_v20, %v90_v17  ;;  %v213_v23 = vpop.f32.mrb[1].mxu0  ;;  %v673_v17 = vld [vmem:[#allocation4] ss:$0 sm:$0xff] }
 0x11f   :  { %v214_v25 = vadd.f32 %v213_v23, %v94_v19  ;;  %v215_v26 = vpop.f32.mrb[2].mxu0 }
 0x120   :  { %v218_v27 = vmul.f32 0.2, %v212_v22  ;;  %v216_v28 = vpop.f32.mrb[3].mxu0 }
 0x121   :  { %v219_v29 = vmul.f32 0.2, %v214_v25 }
 0x122   :  { %v220_v30 = vmax.f32 %v212_v22, %v218_v27 }
 0x123   :  { %v221_v31 = vmax.f32 %v214_v25, %v219_v29 }
 0x124   :  { %v658_v33 = vpack.c.bf16 %v220_v30, %v220_v30 }
 0x125   :  { %v655_v32 = vpack.c.bf16 %v221_v31, %v221_v31 }
 0x127   :  { %656 = vmatprep.mubr.msk.bf16.mxu1 %vm654_vm2, %v655_v32 }
 0x128   :  { %659 = vmatmul.mubr.msk.bf16.vlgmr.msra.gmra.mrb[0].mxu1 %vm657_vm3, %v658_v33 }
 0x1fb   :  { %v690_v48 = vpop.f32.mrb[0].mxu1 }
 0x1fc   :  { %v691_v51 = vpop.f32.mrb[1].mxu1 }
 0x1fd   :  { %v692_v52 = vadd.f32 %v691_v51, %v690_v48  ;;  %v693_v37 = vpop.f32.mrb[2].mxu1 }
 0x1fe   :  { %v694_v54 = vpop.f32.mrb[3].mxu1 }
 0x1ff   :  { %v440_v55 = vadd.f32 %v692_v52, %v637_v50 }
 0x201   :  { %v445_v56 = vmul.f32 0.2, %v440_v55 }
 0x203   :  { %v446_v57 = vmax.f32 %v440_v55, %v445_v56 }
 0x205   :  { %v670_v58 = vpack.c.bf16 %v446_v57, %v446_v57 }
 0x207   :  { %722 = vmatmul.mubr.msk.bf16.vlgmr.msra.gmra.mrb[4].mxu0 %vm669_vm6, %v670_v58 }
 0x2da   :  { %v566_v6 = vpop.f32.mrb[4].mxu0 }
 0x2db   :  { %v567_v8 = vadd.f32 %v660_v5, %v566_v6  ;;  %v723_v9 = vpop.f32.mrb[5].mxu0 }
 0x2dc   :  { %v569_v11 = vpop.f32.mrb[6].mxu0 }
 0x2dd   :  { %v572_v49 = vmul.f32 0.2, %v567_v8  ;;  %v724_v12 = vpop.f32.mrb[7].mxu0 }
 0x2df   :  { %v573_v13 = vmax.f32 %v567_v8, %v572_v49 }
 0x2e1   :  { %v586_v15 = vsel %vm585_vm7, %v573_v13, 0.0 }
 0x2e2   :  { %v594_v10 = vmul.f32 %v672_v14, %v586_v15 }
 0x2e4   :  { %v596_v16 = vsel %vm595_vm8, %v594_v10, 0.0 }
 0x2e5   :  { %597 = vadd.xlane.f32.xlu0 %v596_v16 }
 0x372   :  { %v598_v18 = vpop.xlane.xlu0 %597 }
 0x373   :  { %v606_v19 = vadd.f32 %v673_v17, %v598_v18 }
 0x375   :  { %v607_v20 = vsub.f32 0.0, %v606_v19 }
 0x377   :  { %v608_v21 = vmul.f32 1.442695, %v607_v20 }
 0x379   :  { %782 = vpow2.f32 %v608_v21 }
 0x383   :  { %v783_v22 = vpop.eup %782 }
 0x384   :  { %v610_v23 = vadd.f32 1.0, %v783_v22 }
 0x386   :  { %784 = vrcp.f32 %v610_v23 }
 0x390   :  { %v785_v24 = vpop.eup %784 }
 0x391   :  { %614 = vst.msk [vmem:[%s1000_s10] sm:$0xff] %vm613_vm9, %v785_v24 }
 0x392   :  { %619 = vsyncpa [#allocation6], 1 }
 0x393   :  { %620 = vsyncpa [#allocation8], 1 }

</bundles_post_ra>
